<compile_context>
chip_gen: v7x
topology: tpu7x:2x2x1
jax: 0.10.0
libtpu: 0.0.40
codegen_flags: <defaults>
</compile_context>

<pallas_src>
import functools

import jax
import jax.numpy as jnp
from jax.experimental import pallas as pl
from jax.experimental.pallas import tpu as pltpu


def _round_up(x, m):
    return ((x + m - 1) // m) * m


def _cosine_activation_kernel(tau_ref, wcat_ref, bcat_ref, out_ref, *, k1):
    # y = tau @ [w | w0] + [b | b0]   (single MXU matmul, f32 accumulation)
    y = (
        jnp.dot(tau_ref[...], wcat_ref[...], preferred_element_type=jnp.float32)
        + bcat_ref[...]
    )
    n = y.shape[1]

    if k1 <= 0:
        # Degenerate: no cosine branch.
        out_ref[...] = y.astype(out_ref.dtype)
        return

    # Static lane-aligned extent of the cosine work: only the vregs that
    # actually contain cosine lanes go through the EUP.
    k1c = min(_round_up(k1, 128), n)
    head = y[:, :k1c]
    if k1c == k1:
        head = jnp.cos(head)
    else:
        # Single boundary vreg: mask built from a (1, k1c) iota (cheap sublane
        # broadcast), not a full-tile iota.
        lane = jax.lax.broadcasted_iota(jnp.int32, (1, k1c), 1)
        mask = jnp.broadcast_to(lane < k1, head.shape)
        head = jnp.where(mask, jnp.cos(head), head)

    out_ref[:, :k1c] = head.astype(out_ref.dtype)
    if k1c < n:
        # Linear branch beyond the lane-aligned cosine region: pure passthrough,
        # stored at a 128-lane boundary.
        out_ref[:, k1c:] = y[:, k1c:].astype(out_ref.dtype)


def cosine_activation(tau, w, b, w0, b0, *, tm_max=2048):
    """Pallas implementation of CosineActivation.forward.

    tau: (M, in_features)
    w:   (in_features, out_features - nmodes), b: (out_features - nmodes,)
    w0:  (in_features, nmodes),                b0: (nmodes,)
    returns (M, out_features) = concat([cos(tau@w + b), tau@w0 + b0], -1)
    """
    M, in_features = tau.shape
    k1 = w.shape[1]          # cosine-branch width (out_features - nmodes)
    k2 = w0.shape[1]         # linear-branch width (nmodes)
    n_out = k1 + k2

    # Fuse the two matmuls into one (concat order matches torch.cat([v1, v2])).
    w_cat = jnp.concatenate([w, w0], axis=1)
    b_cat = jnp.concatenate([b, b0]).reshape(1, n_out)

    # Sublane granularity for the I/O dtype (8 for f32, 16 for bf16, ...).
    itemsize = jnp.dtype(tau.dtype).itemsize
    sub = {4: 8, 2: 16, 1: 32}.get(itemsize, 8)

    # Tile M: as large as possible (amortize per-grid-step overhead, approach
    # the HBM roofline knee), but
    #  * double-buffered in/out tiles + resident weights stay well under the
    #    smallest scoped-VMEM default (16 MiB on v5e; v7x has 64 MiB physical),
    #  * at least 2 grid steps so the "parallel" axis shards across v7x's TCs.
    weight_bytes = 2 * (in_features * n_out + n_out) * itemsize
    budget = max(sub * 2 * (in_features + n_out) * itemsize,
                 8 * 1024 * 1024 - weight_bytes)
    row_bytes = (in_features + n_out) * itemsize
    tm_budget = max(sub, budget // (2 * row_bytes))
    tm_split = _round_up(max(1, pl.cdiv(M, 2)), sub)
    tm = int(min(tm_max, tm_budget, tm_split))
    tm = max(sub, (tm // sub) * sub)

    grid = (pl.cdiv(M, tm),)

    kernel = functools.partial(_cosine_activation_kernel, k1=k1)

    out = pl.pallas_call(
        kernel,
        # True output shape: no lane padding, no row padding, no post-slice.
        out_shape=jax.ShapeDtypeStruct((M, n_out), tau.dtype),
        grid=grid,
        in_specs=[
            # tau: tiled along M (ragged last block handled by Pallas).
            pl.BlockSpec((tm, in_features), lambda i: (i, 0)),
            # fused weights / bias: single resident block across all grid steps.
            pl.BlockSpec((in_features, n_out), lambda i: (0, 0)),
            pl.BlockSpec((1, n_out), lambda i: (0, 0)),
        ],
        out_specs=pl.BlockSpec((tm, n_out), lambda i: (i, 0)),
        compiler_params=pltpu.CompilerParams(
            # Independent M tiles -> parallel (shards across v7x's 2 TensorCores;
            # harmless on single-TC v5e/v6e).
            dimension_semantics=("parallel",)
        ),
    )(tau, w_cat, b_cat)

    return out


def _xavier_uniform(key, shape, dtype=jnp.float32):
    fan_in, fan_out = shape
    a = jnp.sqrt(6.0 / (fan_in + fan_out))
    return jax.random.uniform(key, shape, dtype=dtype, minval=-a, maxval=a)


if __name__ == "__main__":
    # Module hyper-params (synthetic, deterministic init).
    in_features = 8
    nmodes = 16
    out_features = 48          # cosine branch width = out_features - nmodes = 32
    M = 16                     # batch of tau vectors

    key = jax.random.PRNGKey(0)
    k_tau, k_w0, k_b0, k_w, k_b = jax.random.split(key, 5)

    # Parameters (shapes per CosineActivation.__init__; xavier_uniform on w/w0,
    # randn on biases, matching the PyTorch init semantics).
    w0 = _xavier_uniform(k_w0, (in_features, nmodes))
    b0 = jax.random.normal(k_b0, (nmodes,), dtype=jnp.float32)
    w = _xavier_uniform(k_w, (in_features, out_features - nmodes))
    b = jax.random.normal(k_b, (out_features - nmodes,), dtype=jnp.float32)

    tau = jax.random.normal(k_tau, (M, in_features), dtype=jnp.float32)

    out = cosine_activation(tau, w, b, w0, b0)
    out = jax.block_until_ready(out)

    # Pure-JAX reference for correctness.
    ref_v1 = jnp.cos(tau @ w + b)
    ref_v2 = tau @ w0 + b0
    ref = jnp.concatenate([ref_v1, ref_v2], axis=-1)

    assert out.shape == (M, out_features), out.shape
    assert jnp.allclose(out, ref, atol=1e-5, rtol=1e-5), "mismatch vs reference"

    print("KERNEL_OK")
</pallas_src>

<mosaic_0001>
module attributes {stable_mosaic.version = 11 : i64} {
  func.func @_cosine_activation_kernel(%arg0: i32, %arg1: memref<8x8xf32, #tpu.memory_space<vmem>>, %arg2: memref<8x48xf32, #tpu.memory_space<vmem>>, %arg3: memref<1x48xf32, #tpu.memory_space<vmem>>, %arg4: memref<8x48xf32, #tpu.memory_space<vmem>>) attributes {dimension_semantics = [#tpu.dimension_semantics<parallel>], iteration_bounds = array<i64: 2>, scalar_prefetch = 0 : i64, scratch_operands = 0 : i64, tpu.core_type = #tpu.core_type<tc>, window_params = [{transform_indices = @transform_0, window_bounds = array<i64: 8, 8>}, {pipeline_mode = #tpu.pipeline_mode<synchronous>, transform_indices = @transform_1, window_bounds = array<i64: 8, 48>}, {pipeline_mode = #tpu.pipeline_mode<synchronous>, transform_indices = @transform_2, window_bounds = array<i64: 1, 48>}, {transform_indices = @transform_3, window_bounds = array<i64: 8, 48>}]} {
    %c0 = arith.constant 0 : index
    %c0_0 = arith.constant 0 : index
    %0 = vector.load %arg1[%c0, %c0_0] : memref<8x8xf32, #tpu.memory_space<vmem>>, vector<8x8xf32>
    %c0_1 = arith.constant 0 : index
    %c0_2 = arith.constant 0 : index
    %1 = vector.load %arg2[%c0_1, %c0_2] : memref<8x48xf32, #tpu.memory_space<vmem>>, vector<8x48xf32>
    %cst = arith.constant dense<0.000000e+00> : vector<8x48xf32>
    %2 = tpu.matmul %0, %1, %cst {dimension_numbers = #tpu.dot_dimension_numbers<[1], [0], [0], [1], [0, 0, 1, 1], [], []>} : vector<8x8xf32>, vector<8x48xf32>, vector<8x48xf32> -> vector<8x48xf32>
    %c0_3 = arith.constant 0 : index
    %c0_4 = arith.constant 0 : index
    %3 = vector.load %arg3[%c0_3, %c0_4] : memref<1x48xf32, #tpu.memory_space<vmem>>, vector<1x48xf32>
    %4 = vector.broadcast %3 : vector<1x48xf32> to vector<8x48xf32>
    %5 = arith.addf %2, %4 : vector<8x48xf32>
    %6 = tpu.iota {dimensions = array<i32: 1>} : vector<1x48xi32>
    %c32_i32 = arith.constant 32 : i32
    %7 = vector.broadcast %c32_i32 : i32 to vector<1x48xi32>
    %8 = arith.cmpi slt, %6, %7 : vector<1x48xi32>
    %9 = vector.shape_cast %8 : vector<1x48xi1> to vector<1x48xi1>
    %10 = vector.broadcast %9 : vector<1x48xi1> to vector<8x48xi1>
    %11 = math.cos %5 : vector<8x48xf32>
    %12 = arith.select %10, %11, %5 : vector<8x48xi1>, vector<8x48xf32>
    %c0_5 = arith.constant 0 : index
    %c0_6 = arith.constant 0 : index
    %13 = vector.load %arg4[%c0_5, %c0_6] : memref<8x48xf32, #tpu.memory_space<vmem>>, vector<8x48xf32>
    tpu.vector_store %arg4[%c0_5, %c0_6], %12 {strides = array<i32>} : memref<8x48xf32, #tpu.memory_space<vmem>>, vector<8x48xf32>,
    return
  }
  func.func @transform_0(%arg0: i32) -> (i32, i32) {
    %c0_i32 = arith.constant 0 : i32
    %c0_i32_0 = arith.constant 0 : i32
    return %arg0, %c0_i32 : i32, i32
  }
  func.func @transform_1(%arg0: i32) -> (i32, i32) {
    %c0_i32 = arith.constant 0 : i32
    %c0_i32_0 = arith.constant 0 : i32
    %c0_i32_1 = arith.constant 0 : i32
    return %c0_i32, %c0_i32_0 : i32, i32
  }
  func.func @transform_2(%arg0: i32) -> (i32, i32) {
    %c0_i32 = arith.constant 0 : i32
    %c0_i32_0 = arith.constant 0 : i32
    %c0_i32_1 = arith.constant 0 : i32
    return %c0_i32, %c0_i32_0 : i32, i32
  }
  func.func @transform_3(%arg0: i32) -> (i32, i32) {
    %c0_i32 = arith.constant 0 : i32
    %c0_i32_0 = arith.constant 0 : i32
    return %arg0, %c0_i32 : i32, i32
  }
}

</mosaic_0001>

<bundles_post_ra>
// kernel: tpu_custom_call.1
= control target key start
LH: loop header
LB: loop body
LE: loop exit
PB: predicated region body
PF: predicated region fallthrough
CT: control target
= control target key end

     0   :  { %8 = vsyncpa [#allocation3], 0  ;;  %s732_s0 = inlined_call_operand.vmem [shape: f32[16,8], index: 0, kind: input, shape index: {}]   ;;  %s733_s1 = inlined_call_operand.vmem [shape: f32[8,48], index: 1, kind: input, shape index: {}]   ;;  %s734_s2 = inlined_call_operand.vmem [shape: f32[1,48], index: 2, kind: input, shape index: {}]   ;;  %s735_s3 = inlined_call_operand.hbm [shape: f32[16,48], index: 3, kind: output, shape index: {}]  }
   0x1   :  { %10 = vsyncpa [#allocation3 + $0x1], 0  ;;  %s604_s12 = smov 0   ;;  %s606_s13 = smov 0  }
   0x2   :  { %s608_s14 = smov 0   ;;  %s610_s15 = smov 0  }
   0x3 LB: > { %s625_s16 = sadd.s32 4294967295, %s573_s15   ;;  %s433_s17 = sadd.s32 4294967294, %s573_s15   ;;  %s573_s15 = sphi %s610_s15, %s741_s15   ;;  %s569_s14 = sphi %s608_s14, %s740_s14   ;;  %s565_s13 = sphi %s606_s13, %s739_s13   ;;  %s561_s12 = sphi %s604_s12, %s738_s12  }
   0x4   : > { %s629_s18 = sadd.s32 1, %s573_s15   ;;  %s91_s19 = sadd.s32 1, %s569_s14 }
   0x5   : > { %s88_s20 = ssub.s32 %s573_s15, %s629_s18  ;;  %p101_p0 = scmp.ne.s32.totalorder %s569_s14, %s565_s13 }
   0x6   : > { %p89_p1 = scmp.eq.s32.totalorder %s88_s20, 0  ;;  %p102_p2 = scmp.eq.s32.totalorder %s625_s16, 1 }
   0x7   : > { %p107_p3 = scmp.ne.s32.totalorder %s565_s13, %s561_s12  ;;  %p108_p4 = scmp.eq.s32.totalorder %s433_s17, 1 }
   0x8   : > { %s640_s21 = scalar_select %p89_p1, %s569_s14, %s91_s19  }
   0x9   : > { %p642_p5 = por %p102_p2, %p101_p0  ;;  %p646_p6 = por %p108_p4, %p107_p3 }
   0xa   : > { %p436_p7 = scmp.ge.s32.totalorder %s573_s15, 1  ;;  %p139_p8 = scmp.lt.s32.totalorder %s573_s15, 3 }
   0xc   : > { %p140_p9 = pnand %p436_p7, %p139_p8 }
   0xd   : > { %v167_v0 = vld [vmem:[%s733_s1] sm:$0xff] (!%p140_p9)  ;;  %p162_p10 = scmp.lt.s32.totalorder (!%p140_p9), %s625_s16, 1  ;;  %v575_v1 = vmov (!%p140_p9), 0.0   ;;  %vm576_vm0 = vmmov (!%p140_p9), 0   ;;  %vm175_vm1 = vcmask (!%p140_p9), 64512   ;;  %s159_s6 = sand.u32 (!%p140_p9), 1, %s565_s13  }
   0xe   : > { %143 = sbr.rel (%p140_p9) target bundleno = 334 (0x14e), region = 32  ;;  %451 = vmatprep.subr.mxu0 (!%p140_p9), %v575_v1  ;;  %453 = vmatprep.mubr.msk.f32.mxu0 (!%p140_p9), %vm576_vm0, %v575_v1  ;;  %v439_v3 = vld [vmem:[%s734_s2] ss:$0 sm:$0xff] (!%p140_p9)  ;;  %v577_v17 = vmov (!%p140_p9), 683565275   ;;  %s437_s7 = sshll.u32 (!%p140_p9), %s159_s6, 3 }
   0xf   : > { %452 = vmatpush3.msra.mxu0 (!%p140_p9), %v167_v0  ;;  %v578_v19 = vmov (!%p140_p9), 2475754826   ;;  %v579_v22 = vmov (!%p140_p9), 2131351028   ;;  %v580_v25 = vmov (!%p140_p9), 2102212464  }
  0x10   : > { %v581_v28 = vmov (!%p140_p9), 920167782   ;;  %v582_v31 = vmov (!%p140_p9), 1326507024   ;;  %s446_s8 = sshll.u32 (!%p140_p9), %s625_s16, 7  ;;  %s161_s9 = scalar_lea.vmem (!%p140_p9), [#allocation2], %s437_s7 }
  0x11   : > { %s374_s10 = sshll.u32 (!%p140_p9), %s161_s9, 4  ;;  %vm358_vm0 = vcmask (!%p140_p9), 392192   ;;  %s689_s19 = scalar_lea.hbm (!%p140_p9), %s735_s3, %s446_s8  ;;  %s691_s10 = int_to_ptr.vmem [resolvable:$true] %s374_s10 }
  0x12   : > { %s511_s20 = scalar_lea.vmem (!%p140_p9), %s691_s10, 128  ;;  %s583_s24 = smov (!%p140_p9), [#allocation2]  }
  0x13   : > { %p512_p11 = scmp.ne.s32.totalorder (!%p140_p9), %s691_s10, %s511_s20  ;;  %s515_s25 = sshll.u32 (!%p140_p9), %s583_s24, 4  ;;  %s516_s25 = int_to_ptr.vmem [resolvable:$false] %s515_s25 }
  0x14   : > { %p518_p0 = scmp.lt.s32.totalorder (!%p140_p9), %s691_s10, %s516_s25 }
  0x15   : > { %s163_s26 = scalar_select %p162_p10, %s625_s16, 1 }
  0x16   : > { %s361_s16 = scalar_lea.sflag [#allocation3], %s159_s6  ;;  %p513_p12 = pnand %p512_p11, %p642_p5 }
  0x17   : > { %s438_s27 = sshll.u32 %s163_s26, 3  ;;  %s517_s26 = scalar_lea.vmem %s516_s25, 256 }
  0x18   : > { %s165_s30 = scalar_lea.vmem %s732_s0, %s438_s27  ;;  %p514_p13 = pneg %p513_p12 }
  0x19   : > { %v166_v2 = vld [vmem:[%s165_s30] sm:$0xff]  ;;  %p519_p1 = scmp.lt.s32.totalorder %s517_s26, %s511_s20 }
  0x1a   : > { %454 = vmatmul.mubr.msk.f32.vlgmr.msra.gmra.mrb[0].mxu0 %vm175_vm1, %v166_v2 }
  0x1b   : > { %p520_p2 = por %p519_p1, %p518_p0 }
  0x1d   : > { %p521_p3 = pnand %p520_p2, %p514_p13 }
  0xed   : > { %v245_v4 = vpop.f32.mrb[0].mxu0 }
  0xee   : > { %v663_v5 = vadd.f32 %v439_v3, %v245_v4  ;;  %v455_v6 = vpop.f32.mrb[1].mxu0 }
  0xf0   : > { %v257_v7 = vand.u32 2139095040, %v663_v5  ;;  %v254_v11 = vand.u32 2147483647, %v663_v5  ;;  %vm256_vm9 = vcmp.lt.s32.totalorder %v663_v5, 0  ;;  %vm346_vm15 = vweird.f32 %v663_v5 }
  0xf2   : > { %v258_v8 = vshrl.u32 %v257_v7, 23  ;;  %v261_v14 = vand.u32 8388607, %v254_v11  ;;  %vm255_vm10 = vcmp.le.f32.partialorder %v254_v11, 0.7853982 }
  0xf4   : > { %v441_v9 = vadd.s32 4294967169, %v258_v8  ;;  %v262_v33 = vor.u32 8388608, %v261_v14 }
  0xf6   : > { %v264_v10 = vadd.s32 1, %v441_v9  ;;  %v302_v47 = vshll.u32 %v262_v33, 8 }
  0xf8   : > { %vm265_vm2 = vcmp.gt.s32.totalorder %v264_v10, 0 }
  0xf9   : > { %v266_v12 = vsel %vm265_vm2, %v264_v10, 0 }
  0xfa   : > { %v268_v13 = vand.u32 31, %v266_v12  ;;  %v267_v16 = vshrl.u32 %v266_v12, 5 }
  0xfc   : > { %v269_v15 = vsub.s32 32, %v268_v13  ;;  %v271_v18 = vshll.u32 %v577_v17, %v268_v13  ;;  %v274_v20 = vshll.u32 %v578_v19, %v268_v13  ;;  %v277_v24 = vshll.u32 %v579_v22, %v268_v13 }
  0xfd   : > { %v280_v27 = vshll.u32 %v580_v25, %v268_v13  ;;  %v283_v30 = vshll.u32 %v581_v28, %v268_v13  ;;  %vm286_vm3 = vcmp.lt.s32.totalorder %v267_v16, 1  ;;  %vm289_vm4 = vcmp.lt.s32.totalorder %v267_v16, 4 }
  0xfe   : > { %v272_v21 = vshrl.u32 %v578_v19, %v269_v15  ;;  %v275_v23 = vshrl.u32 %v579_v22, %v269_v15  ;;  %v278_v26 = vshrl.u32 %v580_v25, %v269_v15  ;;  %v281_v29 = vshrl.u32 %v581_v28, %v269_v15 }
  0xff   : > { %v284_v32 = vshrl.u32 %v582_v31, %v269_v15  ;;  %v270_v42 = vshrl.u32 %v577_v17, %v269_v15  ;;  %vm288_vm5 = vcmp.lt.s32.totalorder %v267_v16, 3  ;;  %vm287_vm6 = vcmp.lt.s32.totalorder %v267_v16, 2 }
 0x100   : > { %v273_v34 = vor.u32 %v272_v21, %v271_v18  ;;  %v276_v35 = vor.u32 %v275_v23, %v274_v20  ;;  %v279_v36 = vor.u32 %v278_v26, %v277_v24  ;;  %v282_v37 = vor.u32 %v281_v29, %v280_v27 }
 0x101   : > { %v285_v38 = vor.u32 %v284_v32, %v283_v30  ;;  %v249_v26 = vlaneseq }
 0x102   : > { %v291_v39 = vsel %vm289_vm4, %v279_v36, 2102212464  ;;  %v294_v40 = vsel %vm286_vm3, %v273_v34, %v276_v35  ;;  %v298_v41 = vsel %vm286_vm3, %v276_v35, %v279_v36  ;;  %v295_v43 = vsel %vm289_vm4, %v282_v37, 920167782 }
 0x103   : > { %v299_v44 = vsel %vm289_vm4, %v285_v38, 1326507024  ;;  %v296_v45 = vsel %vm288_vm5, %v279_v36, %v295_v43  ;;  %v290_v48 = vsel %vm286_vm3, %v270_v42, %v273_v34  ;;  %v292_v49 = vsel %vm288_vm5, %v276_v35, %v291_v39 }
 0x104   : > { %v300_v46 = vsel %vm288_vm5, %v282_v37, %v299_v44  ;;  %v297_v50 = vsel %vm287_vm6, %v294_v40, %v296_v45  ;;  %v293_v56 = vsel %vm287_vm6, %v290_v48, %v292_v49  ;;  %v250_v29 = vand.u32 127, %v249_v26 }
 0x105   : > { %v301_v51 = vsel %vm287_vm6, %v298_v41, %v300_v46  ;;  %v672_v54 = vmul.u32.u64.low %v302_v47, %v297_v50  ;;  %v673_v55 = vmul.u32.u64.high %v302_v47, %v297_v50, %v672_v54  ;;  %v309_v58 = vmul.u32 %v302_v47, %v293_v56 }
 0x106   : > { %v669_v52 = vmul.u32.u64.low %v302_v47, %v301_v51  ;;  %v670_v53 = vmul.u32.u64.high %v302_v47, %v301_v51, %v669_v52  ;;  %vm251_vm13 = vcmp.lt.s32.totalorder %v250_v29, 32 }
 0x107   : > { %v312_v57 = vadd.s32 1, %v673_v55 }
 0x108   : > { %vm311_vm7 = vc.u32 %v670_v53, %v672_v54  ;;  %v310_v7 = vadd.s32 %v672_v54, %v670_v53 }
 0x109   : > { %v313_v59 = vsel %vm311_vm7, %v312_v57, %v673_v55 }
 0x10a   : > { %v314_v60 = vadd.s32 %v313_v59, %v309_v58 }
 0x10c   : > { %v315_v61 = vadd.s32 536870912, %v314_v60 }
 0x10e   : > { %v316_v62 = vshrl.u32 %v315_v61, 30 }
 0x110   : > { %v317_v63 = vshll.u32 %v316_v62, 30  ;;  %v340_v22 = vsub.s32 4, %v316_v62 }
 0x112   : > { %v318_v0 = vsub.s32 %v314_v60, %v317_v63  ;;  %v341_v24 = vsel %vm256_vm9, %v340_v22, %v316_v62 }
 0x113   : > { %v343_v25 = vsel %vm255_vm10, 0, %v341_v24 }
 0x114   : > { %v320_v1 = vsub.s32 0, %v318_v0  ;;  %v347_v27 = vand.u32 3, %v343_v25 }
 0x116   : > { %v442_v2 = vmin.u32 %v320_v1, %v318_v0  ;;  %vm352_vm11 = vcmp.eq.s32.totalorder %v347_v27, 2  ;;  %vm349_vm12 = vcmp.eq.s32.totalorder %v347_v27, 0  ;;  %vm348_vm14 = vcmp.lt.s32.totalorder %v347_v27, 2 }
 0x118   : > { %v322_v3 = vclz %v442_v2 }
 0x11a   : > { %v443_v4 = vadd.s32 4294967294, %v322_v3 }
 0x11c   : > { %vm444_vm8 = vcmp.lt.s32.totalorder %v443_v4, 0 }
 0x11d   : > { %v325_v6 = vsel %vm444_vm8, 0, %v443_v4 }
 0x11e   : > { %v326_v8 = vsub.s32 32, %v325_v6  ;;  %v330_v9 = vsub.s32 4294967266, %v325_v6  ;;  %v327_v10 = vshll.u32 %v318_v0, %v325_v6 }
 0x120   : > { %v328_v12 = vshrl.u32 %v310_v7, %v326_v8  ;;  %v331_v13 = vadd.s32 127, %v330_v9 }
 0x122   : > { %v329_v14 = vor.u32 %v328_v12, %v327_v10  ;;  %v332_v15 = vshll.u32 %v331_v13, 23 }
 0x124   : > { %v333_v16 = vor.u32 4788187, %v332_v15  ;;  %v336_v18 = vcvt.s32.f32 %v329_v14 }
 0x126   : > { %v334_v17 = vand.u32 2147483647, %v333_v16 }
 0x128   : > { %v337_v19 = vmul.f32 %v336_v18, %v334_v17 }
 0x12a   : > { %v338_v20 = vxor.u32 2147483648, %v337_v19 }
 0x12c   : > { %v339_v21 = vsel %vm256_vm9, %v338_v20, %v337_v19 }
 0x12d   : > { %v342_v23 = vsel %vm255_vm10, %v663_v5, %v339_v21 }
 0x12e   : > { %507 = vcosq.f32 %v342_v23 }
 0x12f   : > { %509 = vsinq.f32 %v342_v23 }
 0x138   : > { %v508_v28 = vpop.eup %507 }
 0x139   : > { %v510_v30 = vpop.eup %509  ;;  %v353_v31 = vxor.u32 2147483648, %v508_v28 }
 0x13a   : > { %v350_v32 = vxor.u32 2147483648, %v510_v30 }
 0x13b   : > { %v354_v11 = vsel %vm352_vm11, %v353_v31, %v510_v30 }
 0x13c   : > { %v351_v33 = vsel %vm349_vm12, %v508_v28, %v350_v32 }
 0x13d   : > { %v355_v34 = vsel %vm348_vm14, %v351_v33, %v354_v11 }
 0x13e   : > { %v356_v35 = vsel %vm346_vm15, nan, %v355_v34 }
 0x13f   : > { %v357_v36 = vsel %vm251_vm13, %v356_v35, %v663_v5 }
 0x140   : > { %359 = vst.msk [vmem:[%s161_s9] sm:$0xff] %vm358_vm0, %v357_v36 }
 0x141   : > { %524 = shalt.err (!%p521_p3)
}
 0x142   : > { %s525_s27 = scalar_lea.hbm %s689_s19, 128  ;;  %s529_s30 = scalar_lea.hbm %s735_s3, 256 }
 0x143   : > { %p526_p4 = scmp.ne.s32.totalorder %s689_s19, %s525_s27  ;;  %p530_p9 = scmp.lt.u32.totalorder %s689_s19, %s735_s3 }
 0x144   : > { %p531_p10 = scmp.lt.u32.totalorder %s529_s30, %s525_s27  ;;  %p533_p12 = scmp.lt.u32.totalorder %s525_s27, %s689_s19 }
 0x145   : > { %p527_p7 = pnand %p526_p4, %p642_p5 }
 0x146   : > { %p532_p11 = por %p531_p10, %p530_p9 }
 0x147   : > { %p528_p8 = pneg %p527_p7 }
 0x148   : > { %p534_p13 = por %p533_p12, %p532_p11 }
 0x14a   : > { %p535_p0 = pnand %p534_p13, %p528_p8 }
 0x14c   : > { %538 = shalt.err (!%p535_p0)
}
 0x14d   : > { %460 = dma.vmem_to_hbm [thread:$0]  (%p642_p5), %s691_s10, 128, %s689_s19, %s361_s16  }
 0x14e PF: > { %p466_p1 = scmp.ge.s32.totalorder %s573_s15, 2  ;;  %s386_s6 = sand.u32 1, %s561_s12  }
 0x14f   : > { %s387_s7 = scalar_lea.sflag [#allocation3], %s386_s6 }
 0x150   : > { %p463_p2 = pnand %p466_p1, %p646_p6 }
 0x152   : > { %556 = dma.done.wait (!%p463_p2), %s387_s7, 128  }
 0x153   : > { %558 = vsyncadd (!%p463_p2), %s387_s7, 4294967168  ;;  %p13_p3 = scmp.ge.s32.totalorder %s629_s18, 4   ;;  %s738_s12 = smov %s565_s13 }
 0x154   : > { %s739_s13 = smov %s569_s14  ;;  %s740_s14 = smov %s640_s21 }
 0x155   : > { %s741_s15 = smov %s629_s18  ;;  %15 = sbr.rel (!%p13_p3) target bundleno = 3 (0x3), region = 67 }
 0x15c   :  { %392 = vsyncpa [#allocation3], 1 }
 0x15d   :  { %394 = vsyncpa [#allocation3 + $0x1], 1 }

</bundles_post_ra>
